<compile_context>
chip_gen: v6e
topology: v6e:2x2x1
jax: 0.10.0
libtpu: 0.0.40
codegen_flags: <defaults>
</compile_context>

<pallas_src>
import functools

import jax
import jax.numpy as jnp
from jax.experimental import pallas as pl
from jax.experimental.pallas import tpu as pltpu

_EPS = 1e-5


def layernorm_kernel(x_ref, scale_ref, shift_ref, o_ref, *, d_actual, masked):
    # x_ref: (TILE_ROWS, DP); scale_ref/shift_ref: (1, DP); DP is lane-dense
    # (multiple of 128). d_actual is the true emb_dim (pad lanes hold zeros).
    x = x_ref[...].astype(jnp.float32)
    inv_d = 1.0 / d_actual

    # Pass 1: mean. Zero-filled pad lanes contribute nothing to the sum.
    mean = jnp.sum(x, axis=-1, keepdims=True) * inv_d
    centered = x - mean

    # Pass 2: population variance of the centered values
    # (== torch.var(dim=-1, unbiased=False)); mask the pad lanes, which would
    # otherwise contribute (-mean)^2 each.
    if masked:
        lane = jax.lax.broadcasted_iota(jnp.int32, x.shape, dimension=x.ndim - 1)
        cm = jnp.where(lane < d_actual, centered, 0.0)
    else:
        cm = centered
    var = jnp.sum(cm * cm, axis=-1, keepdims=True) * inv_d
    inv_std = jax.lax.rsqrt(var + _EPS)

    scale = scale_ref[...].astype(jnp.float32)
    shift = shift_ref[...].astype(jnp.float32)
    o_ref[...] = (centered * inv_std * scale + shift).astype(o_ref.dtype)


def _vmem_capacity_bytes():
    try:
        return int(pltpu.get_tpu_info().vmem_capacity_bytes)
    except Exception:
        # Conservative fallback: v7x has 64 MiB per TensorCore.
        return 64 * 1024 * 1024


def _sublane_multiple(dtype):
    # 32-bit: 8 rows/vreg; bf16 packs 16; int8/fp8 pack 32 along sublanes.
    return max(8, 32 // jnp.dtype(dtype).itemsize)


def _pick_tile_rows(rows, dp, dtype, vmem_cap):
    """Byte-targeted row tile: ~8 MiB per input buffer (HBM-roofline knee on
    v5e/v6e/v7x) while keeping the full resident working set -- double-buffered
    in + out tiles plus the in-kernel f32 intermediates -- under ~60% of VMEM."""
    itemsize = jnp.dtype(dtype).itemsize
    sub = _sublane_multiple(dtype)
    rows_rounded = -(-rows // sub) * sub

    row_bytes = dp * itemsize
    per_row_resident = 4 * row_bytes + 2 * dp * 4  # 2x in + 2x out + 2x f32 tmp
    target_rows = (8 << 20) // row_bytes
    budget_rows = (vmem_cap * 6 // 10) // max(1, per_row_resident)

    tr = max(sub, min(int(target_rows), int(budget_rows), rows_rounded))
    tr = max(sub, (tr // sub) * sub)
    return tr, rows_rounded, sub


def layer_norm(x, scale, shift):
    """x: [..., emb_dim]; scale/shift: [emb_dim]."""
    orig_shape = x.shape
    d = orig_shape[-1]
    rows = 1
    for s in orig_shape[:-1]:
        rows *= s

    dtype = x.dtype
    itemsize = jnp.dtype(dtype).itemsize

    # Lane-dense last dim: pad D up to a multiple of 128 so loads/stores are
    # unmasked full-lane ops. Real emb_dims (768/1024/4096) are untouched.
    dp = ((d + 127) // 128) * 128
    masked = dp != d

    x2 = x.reshape(rows, d)
    scale2 = scale.reshape(1, d)
    shift2 = shift.reshape(1, d)
    if masked:
        x2 = jnp.pad(x2, ((0, 0), (0, dp - d)))
        scale2 = jnp.pad(scale2, ((0, 0), (0, dp - d)))
        shift2 = jnp.pad(shift2, ((0, 0), (0, dp - d)))

    vmem_cap = _vmem_capacity_bytes()
    tile_rows, rows_rounded, sub = _pick_tile_rows(rows, dp, dtype, vmem_cap)

    # v7x has 2 TensorCores sharing the "parallel" grid axis: make sure there
    # are >= 2 grid steps whenever the row count permits (>= 4 when each tile
    # still carries >= 4 MiB). A handful of extra ~0.35 us steps is noise on
    # single-core v5e/v6e.
    if rows_rounded >= 2 * sub:
        steps = 4 if (rows_rounded // 4) * dp * itemsize >= (4 << 20) else 2
        cap = -(-rows_rounded // steps)
        cap = max(sub, -(-cap // sub) * sub)
        tile_rows = min(tile_rows, cap)

    # Partial last block handled by Pallas (edge rows masked on writeback;
    # per-row stats keep garbage rows from contaminating valid ones).
    grid = (pl.cdiv(rows, tile_rows),)

    # Scoped VMEM: 2x(in tile) + 2x(out tile) + f32 intermediates + params.
    tile_bytes = tile_rows * dp * itemsize
    f32_tmp = 2 * tile_rows * dp * 4
    needed = 4 * tile_bytes + f32_tmp + 4 * dp * 4 + (4 << 20)
    vmem_limit = int(min(max(needed, 32 << 20), vmem_cap * 85 // 100))

    kernel = functools.partial(layernorm_kernel, d_actual=d, masked=masked)

    out = pl.pallas_call(
        kernel,
        out_shape=jax.ShapeDtypeStruct((rows, dp), dtype),
        grid_spec=pltpu.PrefetchScalarGridSpec(
            num_scalar_prefetch=0,
            grid=grid,
            in_specs=[
                pl.BlockSpec((tile_rows, dp), lambda i: (i, 0)),
                # Constant index_map -> fetched once, not per grid step.
                pl.BlockSpec((1, dp), lambda i: (0, 0)),
                pl.BlockSpec((1, dp), lambda i: (0, 0)),
            ],
            out_specs=pl.BlockSpec((tile_rows, dp), lambda i: (i, 0)),
        ),
        compiler_params=pltpu.CompilerParams(
            dimension_semantics=("parallel",),
            vmem_limit_bytes=vmem_limit,
        ),
    )(x2, scale2, shift2)

    if masked:
        out = out[:, :d]
    return out.reshape(orig_shape)


def layer_norm_ref(x, scale, shift, eps=_EPS):
    x = x.astype(jnp.float32)
    mean = jnp.mean(x, axis=-1, keepdims=True)
    var = jnp.mean((x - mean) ** 2, axis=-1, keepdims=True)
    norm_x = (x - mean) / jnp.sqrt(var + eps)
    return scale * norm_x + shift


if __name__ == "__main__":
    key = jax.random.PRNGKey(0)
    batch, seq, emb_dim = 2, 8, 32

    x = jax.random.normal(key, (batch, seq, emb_dim), dtype=jnp.float32)
    # Deterministic init matching nn.Parameter(torch.ones/zeros(emb_dim)).
    scale = jnp.ones((emb_dim,), dtype=jnp.float32)
    shift = jnp.zeros((emb_dim,), dtype=jnp.float32)

    out = jax.block_until_ready(layer_norm(x, scale, shift))
    ref = layer_norm_ref(x, scale, shift)
    assert out.shape == x.shape
    assert jnp.allclose(out, ref, atol=1e-5, rtol=1e-5)

    # Ragged row count: exercises the masked partial last block.
    x_odd = jax.random.normal(jax.random.PRNGKey(1), (3, 5, emb_dim), dtype=jnp.float32)
    out_odd = jax.block_until_ready(layer_norm(x_odd, scale, shift))
    ref_odd = layer_norm_ref(x_odd, scale, shift)
    assert jnp.allclose(out_odd, ref_odd, atol=1e-5, rtol=1e-5)

    # bf16 input with lane-dense emb_dim: exercises dtype-aware sublane
    # rounding (16-row multiples) and the no-padding fast path.
    xb = jax.random.normal(jax.random.PRNGKey(2), (4, 8, 128), dtype=jnp.bfloat16)
    sb = jnp.ones((128,), dtype=jnp.float32)
    bb = jnp.zeros((128,), dtype=jnp.float32)
    out_b = jax.block_until_ready(layer_norm(xb, sb, bb))
    ref_b = layer_norm_ref(xb, sb, bb).astype(jnp.bfloat16)
    assert jnp.allclose(out_b.astype(jnp.float32), ref_b.astype(jnp.float32),
                        atol=2e-2, rtol=2e-2)

    print("KERNEL_OK")
</pallas_src>

<mosaic_0001>
module attributes {stable_mosaic.version = 11 : i64} {
  func.func @layernorm_kernel(%arg0: i32, %arg1: memref<8x128xf32, #tpu.memory_space<vmem>>, %arg2: memref<1x128xf32, #tpu.memory_space<vmem>>, %arg3: memref<1x128xf32, #tpu.memory_space<vmem>>, %arg4: memref<8x128xf32, #tpu.memory_space<vmem>>) attributes {dimension_semantics = [#tpu.dimension_semantics<parallel>], iteration_bounds = array<i64: 2>, scalar_prefetch = 0 : i64, scratch_operands = 0 : i64, tpu.core_type = #tpu.core_type<tc>, window_params = [{transform_indices = @transform_0, window_bounds = array<i64: 8, 128>}, {pipeline_mode = #tpu.pipeline_mode<synchronous>, transform_indices = @transform_1, window_bounds = array<i64: 1, 128>}, {pipeline_mode = #tpu.pipeline_mode<synchronous>, transform_indices = @transform_2, window_bounds = array<i64: 1, 128>}, {transform_indices = @transform_3, window_bounds = array<i64: 8, 128>}]} {
    %c0 = arith.constant 0 : index
    %c0_0 = arith.constant 0 : index
    %0 = vector.load %arg1[%c0, %c0_0] : memref<8x128xf32, #tpu.memory_space<vmem>>, vector<8x128xf32>
    %cst = arith.constant dense<0.000000e+00> : vector<8xf32>
    %1 = vector.multi_reduction <add>, %0, %cst [1] : vector<8x128xf32> to vector<8xf32>
    %2 = vector.shape_cast %1 : vector<8xf32> to vector<8x1xf32>
    %cst_1 = arith.constant 3.125000e-02 : f32
    %3 = vector.broadcast %cst_1 : f32 to vector<8x1xf32>
    %4 = arith.mulf %2, %3 : vector<8x1xf32>
    %5 = vector.broadcast %4 : vector<8x1xf32> to vector<8x128xf32>
    %6 = arith.subf %0, %5 : vector<8x128xf32>
    %7 = tpu.iota {dimensions = array<i32: 1>} : vector<8x128xi32>
    %c32_i32 = arith.constant 32 : i32
    %8 = vector.broadcast %c32_i32 : i32 to vector<8x128xi32>
    %9 = arith.cmpi slt, %7, %8 : vector<8x128xi32>
    %cst_2 = arith.constant 0.000000e+00 : f32
    %10 = vector.broadcast %cst_2 : f32 to vector<8x128xf32>
    %11 = arith.select %9, %6, %10 : vector<8x128xi1>, vector<8x128xf32>
    %12 = arith.mulf %11, %11 : vector<8x128xf32>
    %cst_3 = arith.constant dense<0.000000e+00> : vector<8xf32>
    %13 = vector.multi_reduction <add>, %12, %cst_3 [1] : vector<8x128xf32> to vector<8xf32>
    %14 = vector.shape_cast %13 : vector<8xf32> to vector<8x1xf32>
    %cst_4 = arith.constant 3.125000e-02 : f32
    %15 = vector.broadcast %cst_4 : f32 to vector<8x1xf32>
    %16 = arith.mulf %14, %15 : vector<8x1xf32>
    %cst_5 = arith.constant 9.99999974E-6 : f32
    %17 = vector.broadcast %cst_5 : f32 to vector<8x1xf32>
    %18 = arith.addf %16, %17 : vector<8x1xf32>
    %19 = math.rsqrt %18 : vector<8x1xf32>
    %c0_6 = arith.constant 0 : index
    %c0_7 = arith.constant 0 : index
    %20 = vector.load %arg2[%c0_6, %c0_7] : memref<1x128xf32, #tpu.memory_space<vmem>>, vector<1x128xf32>
    %c0_8 = arith.constant 0 : index
    %c0_9 = arith.constant 0 : index
    %21 = vector.load %arg3[%c0_8, %c0_9] : memref<1x128xf32, #tpu.memory_space<vmem>>, vector<1x128xf32>
    %22 = vector.broadcast %19 : vector<8x1xf32> to vector<8x128xf32>
    %23 = arith.mulf %6, %22 : vector<8x128xf32>
    %24 = vector.broadcast %20 : vector<1x128xf32> to vector<8x128xf32>
    %25 = arith.mulf %23, %24 : vector<8x128xf32>
    %26 = vector.broadcast %21 : vector<1x128xf32> to vector<8x128xf32>
    %27 = arith.addf %25, %26 : vector<8x128xf32>
    %c0_10 = arith.constant 0 : index
    %c0_11 = arith.constant 0 : index
    %28 = vector.load %arg4[%c0_10, %c0_11] : memref<8x128xf32, #tpu.memory_space<vmem>>, vector<8x128xf32>
    tpu.vector_store %arg4[%c0_10, %c0_11], %27 {strides = array<i32>} : memref<8x128xf32, #tpu.memory_space<vmem>>, vector<8x128xf32>,
    return
  }
  func.func @transform_0(%arg0: i32) -> (i32, i32) {
    %c0_i32 = arith.constant 0 : i32
    %c0_i32_0 = arith.constant 0 : i32
    return %arg0, %c0_i32 : i32, i32
  }
  func.func @transform_1(%arg0: i32) -> (i32, i32) {
    %c0_i32 = arith.constant 0 : i32
    %c0_i32_0 = arith.constant 0 : i32
    %c0_i32_1 = arith.constant 0 : i32
    return %c0_i32, %c0_i32_0 : i32, i32
  }
  func.func @transform_2(%arg0: i32) -> (i32, i32) {
    %c0_i32 = arith.constant 0 : i32
    %c0_i32_0 = arith.constant 0 : i32
    %c0_i32_1 = arith.constant 0 : i32
    return %c0_i32, %c0_i32_0 : i32, i32
  }
  func.func @transform_3(%arg0: i32) -> (i32, i32) {
    %c0_i32 = arith.constant 0 : i32
    %c0_i32_0 = arith.constant 0 : i32
    return %arg0, %c0_i32 : i32, i32
  }
}

</mosaic_0001>

<bundles_post_ra>
// kernel: tpu_custom_call.1
= control target key start
LH: loop header
LB: loop body
LE: loop exit
PB: predicated region body
PF: predicated region fallthrough
CT: control target
= control target key end

     0   :  { %8 = vsyncpa [#allocation3], 0  ;;  %s628_s0 = inlined_call_operand.hbm [shape: f32[16,128], index: 0, kind: input, shape index: {}]   ;;  %s629_s1 = inlined_call_operand.vmem [shape: f32[1,128], index: 1, kind: input, shape index: {}]   ;;  %s630_s2 = inlined_call_operand.vmem [shape: f32[1,128], index: 2, kind: input, shape index: {}]   ;;  %s631_s3 = inlined_call_operand.hbm [shape: f32[16,128], index: 3, kind: output, shape index: {}]  }
   0x1   :  { %10 = vsyncpa [#allocation3 + $0x1], 0 }
   0x2   :  { %11 = vsyncpa [#allocation4], 0 }
   0x3   :  { %13 = vsyncpa [#allocation4 + $0x1], 0  ;;  %s481_s12 = smov 0   ;;  %s483_s13 = smov 0  }
   0x4   :  { %s485_s14 = smov 0   ;;  %s487_s15 = smov 0  }
   0x5 LB: > { %s502_s16 = sadd.s32 4294967295, %s457_s15   ;;  %s303_s17 = sadd.s32 4294967294, %s457_s15   ;;  %s457_s15 = sphi %s487_s15, %s648_s15   ;;  %s453_s14 = sphi %s485_s14, %s647_s14   ;;  %s449_s13 = sphi %s483_s13, %s646_s13   ;;  %s445_s12 = sphi %s481_s12, %s645_s12  }
   0x6   : > { %s506_s18 = sadd.s32 1, %s457_s15   ;;  %s26_s19 = sadd.s32 1, %s453_s14 }
   0x7   : > { %s23_s20 = ssub.s32 %s457_s15, %s506_s18  ;;  %p33_p0 = scmp.ne.s32.totalorder %s453_s14, %s449_s13 }
   0x8   : > { %p24_p1 = scmp.eq.s32.totalorder %s23_s20, 0  ;;  %p34_p2 = scmp.eq.s32.totalorder %s457_s15, 0 }
   0x9   : > { %p39_p3 = scmp.ne.s32.totalorder %s449_s13, %s445_s12  ;;  %p40_p4 = scmp.eq.s32.totalorder %s502_s16, 0 }
   0xa   : > { %s518_s21 = scalar_select %p24_p1, %s453_s14, %s26_s19  }
   0xb   : > { %p520_p5 = por %p34_p2, %p33_p0  ;;  %p524_p6 = por %p40_p4, %p39_p3 }
   0xc   : > { %p105_p7 = scmp.eq.s32.totalorder %s502_s16, 1  ;;  %p111_p8 = scmp.eq.s32.totalorder %s303_s17, 1 }
   0xd   : > { %s635_s23 = scalar_select %p524_p6, 1, 0 }
   0xe   : > { %p329_p10 = scmp.lt.s32.totalorder %s457_s15, 2  ;;  %p531_p11 = por %p105_p7, %p33_p0 }
   0xf   : > { %p535_p12 = por %p111_p8, %p39_p3  ;;  %s137_s26 = sand.u32 1, %s453_s14  }
  0x10   : > { %s636_s24 = scalar_select %p531_p11, 1, 0 }
  0x11   : > { %s637_s25 = scalar_select %p535_p12, 1, 0 }
  0x12   : > { %s307_s27 = sshll.u32 %s457_s15, 7  ;;  %s306_s28 = sshll.u32 %s137_s26, 3 }
  0x13   : > { %s544_s4 = scalar_lea.hbm %s628_s0, %s307_s27  ;;  %s141_s5 = scalar_lea.vmem [#allocation2], %s306_s28 }
  0x14   : > { %s148_s6 = sshll.u32 %s141_s5, 4  ;;  %p548_p13 = pnand %p329_p10, %p520_p5  ;;  %s552_s6 = int_to_ptr.vmem [resolvable:$true] %s148_s6 }
  0x15   : > { %s138_s8 = scalar_lea.sflag [#allocation3], %s137_s26  ;;  %s365_s9 = scalar_lea.hbm %s544_s4, 128 }
  0x16   : > { %p366_p2 = scmp.ne.s32.totalorder %s544_s4, %s365_s9  ;;  %p367_p3 = pneg %p548_p13 }
  0x17   : > { %s370_s17 = scalar_lea.hbm %s628_s0, 256  ;;  %p371_p5 = scmp.lt.s32.totalorder %s544_s4, %s628_s0 }
  0x18   : > { %p368_p4 = pnand %p367_p3, %p366_p2  ;;  %p372_p8 = scmp.lt.s32.totalorder %s370_s17, %s365_s9 }
  0x1a   : > { %p369_p7 = pneg %p368_p4  ;;  %p373_p10 = por %p372_p8, %p371_p5 }
  0x1c   : > { %p374_p9 = pnand %p373_p10, %p369_p7 }
  0x1e   : > { %377 = shalt.err (!%p374_p9)
}
  0x1f   : > { %s378_s22 = scalar_lea.vmem %s552_s6, 128  ;;  %s459_s26 = smov [#allocation2]  }
  0x20   : > { %p379_p0 = scmp.ne.s32.totalorder %s552_s6, %s378_s22  ;;  %s383_s27 = sshll.u32 %s459_s26, 4  ;;  %s384_s27 = int_to_ptr.vmem [resolvable:$false] %s383_s27 }
  0x21   : > { %s385_s28 = scalar_lea.vmem %s384_s27, 256  ;;  %p386_p4 = scmp.lt.s32.totalorder %s552_s6, %s384_s27 }
  0x22   : > { %p381_p1 = pnand %p379_p0, %p367_p3  ;;  %p387_p12 = scmp.lt.s32.totalorder %s385_s28, %s378_s22 }
  0x24   : > { %p382_p2 = pneg %p381_p1  ;;  %p388_p11 = por %p387_p12, %p386_p4 }
  0x26   : > { %p389_p6 = pnand %p388_p11, %p382_p2 }
  0x28   : > { %392 = shalt.err (!%p389_p6)
}
  0x29   : > { %324 = dma.hbm_to_vmem [thread:$0]  (!%p548_p13), %s544_s4, 128, %s552_s6, %s138_s8  }
  0x2a   : > { %p639_p9 = scmp.lt.s32.totalorder %s457_s15, 3  ;;  %p640_p7 = scmp.ge.s32.totalorder %s457_s15, 1 }
  0x2c   : > { %p154_p0 = pnand %p640_p7, %p639_p9 }
  0x2d   : > { %s579_s29 = sand.u32 (!%p154_p0), 1, %s449_s13   ;;  %p641_p6 = scmp.ne.s32.totalorder (!%p154_p0), %s635_s23, 0 }
  0x2e   : > { %157 = sbr.rel (%p154_p0) target bundleno = 373 (0x175), region = 32  ;;  %s309_s30 = sshll.u32 (!%p154_p0), %s579_s29, 3 }
  0x2f   : > { %s160_s5 = scalar_lea.sflag (!%p154_p0), [#allocation3], %s579_s29  ;;  %s163_s9 = scalar_lea.vmem (!%p154_p0), [#allocation2], %s309_s30 }
  0x33   : > { %436 = dma.done.wait (%p641_p6), %s160_s5, 128  }
  0x34   : > { %438 = vsyncadd (%p641_p6), %s160_s5, 4294967168  ;;  %v186_v0 = vld [vmem:[%s163_s9] sm:$0xff]  ;;  %v191_v1 = vlaneseq  ;;  %s314_s8 = sshll.u32 %s502_s16, 7  ;;  %s185_s10 = scalar_lea.vmem [#allocation5], %s309_s30 }
  0x35   : > { %187 = vadd.xlane.f32.xlu0 %v186_v0  ;;  %v311_v12 = vld [vmem:[%s629_s1] ss:$0 sm:$0xff]  ;;  %s233_s11 = sshll.u32 %s185_s10, 4  ;;  %s231_s20 = scalar_lea.hbm %s631_s3, %s314_s8  ;;  %s234_s11 = int_to_ptr.vmem [resolvable:$true] %s233_s11 }
  0x36   : > { %v192_v2 = vand.u32 127, %v191_v1  ;;  %v312_v14 = vld [vmem:[%s630_s2] ss:$0 sm:$0xff]  ;;  %s220_s22 = scalar_lea.sflag [#allocation4], %s579_s29  ;;  %s393_s26 = scalar_lea.vmem %s234_s11, 128 }
  0x37   : > { %p394_p11 = scmp.ne.s32.totalorder %s234_s11, %s393_s26  ;;  %p642_p12 = scmp.ne.s32.totalorder %s636_s24, 0 }
  0x38   : > { %vm193_vm0 = vcmp.lt.s32.totalorder %v192_v2, 32  ;;  %s460_s27 = smov [#allocation5]  }
  0x39   : > { %p395_p13 = pnand %p394_p11, %p642_p12  ;;  %s397_s28 = sshll.u32 %s460_s27, 4  ;;  %s398_s28 = int_to_ptr.vmem [resolvable:$false] %s397_s28 }
  0x3a   : > { %s399_s16 = scalar_lea.vmem %s398_s28, 256  ;;  %p400_p3 = scmp.lt.s32.totalorder %s234_s11, %s398_s28 }
  0x3b   : > { %p396_p1 = pneg %p395_p13  ;;  %p401_p5 = scmp.lt.s32.totalorder %s399_s16, %s393_s26 }
  0x3d   : > { %p402_p8 = por %p401_p5, %p400_p3 }
  0x3f   : > { %p403_p10 = pnand %p402_p8, %p396_p1 }
  0xbe   : > { %v188_v3 = vpop.xlane.xlu0 %187 }
  0xbf   : > { %v189_v4 = vmul.f32 0.03125, %v188_v3 }
  0xc1   : > { %v190_v5 = vsub.f32 %v186_v0, %v189_v4 }
  0xc3   : > { %v194_v6 = vsel %vm193_vm0, %v190_v5, 0.0 }
  0xc4   : > { %v195_v7 = vmul.f32 %v194_v6, %v194_v6 }
  0xc6   : > { %196 = vadd.xlane.f32.xlu0 %v195_v7 }
 0x14f   : > { %v197_v8 = vpop.xlane.xlu0 %196 }
 0x150   : > { %v198_v9 = vmul.f32 0.03125, %v197_v8 }
 0x152   : > { %v199_v10 = vadd.f32 1e-05, %v198_v9 }
 0x154   : > { %363 = vrsqrt.f32 %v199_v10 }
 0x161   : > { %v364_v11 = vpop.eup %363 }
 0x162   : > { %v203_v13 = vmul.f32 %v364_v11, %v190_v5 }
 0x164   : > { %v210_v15 = vmul.f32 %v311_v12, %v203_v13 }
 0x166   : > { %v217_v16 = vadd.f32 %v312_v14, %v210_v15 }
 0x168   : > { %218 = vst [vmem:[%s185_s10] sm:$0xff] %v217_v16 }
 0x169   : > { %406 = shalt.err (!%p403_p10)
}
 0x16a   : > { %s407_s30 = scalar_lea.hbm %s231_s20, 128  ;;  %s411_s9 = scalar_lea.hbm %s631_s3, 256 }
 0x16b   : > { %p408_p2 = scmp.ne.s32.totalorder %s231_s20, %s407_s30  ;;  %p412_p7 = scmp.lt.s32.totalorder %s231_s20, %s631_s3 }
 0x16c   : > { %p413_p0 = scmp.lt.s32.totalorder %s411_s9, %s407_s30 }
 0x16d   : > { %p409_p4 = pnand %p408_p2, %p642_p12 }
 0x16e   : > { %p414_p6 = por %p413_p0, %p412_p7 }
 0x16f   : > { %p410_p9 = pneg %p409_p4 }
 0x171   : > { %p415_p11 = pnand %p414_p6, %p410_p9 }
 0x173   : > { %418 = shalt.err (!%p415_p11)
}
 0x174   : > { %319 = dma.vmem_to_hbm [thread:$0]  (%p642_p12), %s234_s11, 128, %s231_s20, %s220_s22  }
 0x175 PF: > { %s245_s6 = sand.u32 1, %s445_s12   ;;  %p643_p13 = scmp.ne.s32.totalorder %s637_s25, 0 }
 0x176   : > { %p644_p1 = scmp.ge.s32.totalorder %s457_s15, 2  ;;  %s246_s7 = scalar_lea.sflag [#allocation4], %s245_s6 }
 0x178   : > { %p326_p3 = pnand %p644_p1, %p643_p13 }
 0x17a   : > { %p327_p5 = pneg %p326_p3 }
 0x17c   : > { %440 = dma.done.wait (%p327_p5), %s246_s7, 128  }
 0x17d   : > { %442 = vsyncadd (%p327_p5), %s246_s7, 4294967168  ;;  %p16_p8 = scmp.ge.s32.totalorder %s506_s18, 4   ;;  %s645_s12 = smov %s449_s13 }
 0x17e   : > { %s646_s13 = smov %s453_s14  ;;  %s647_s14 = smov %s518_s21 }
 0x17f   : > { %s648_s15 = smov %s506_s18  ;;  %18 = sbr.rel (!%p16_p8) target bundleno = 5 (0x5), region = 77 }
 0x184   :  { %251 = vsyncpa [#allocation3], 1 }
 0x185   :  { %253 = vsyncpa [#allocation3 + $0x1], 1 }
 0x186   :  { %254 = vsyncpa [#allocation4], 1 }
 0x187   :  { %256 = vsyncpa [#allocation4 + $0x1], 1 }

</bundles_post_ra>
